<compile_context>
chip_gen: v7x
topology: tpu7x:2x2x1
jax: 0.10.0
libtpu: 0.0.40
codegen_flags: <defaults>
</compile_context>

<pallas_src>
import functools
import math

import jax
import jax.numpy as jnp
from jax.experimental import pallas as pl
from jax.experimental.pallas import tpu as pltpu


# ---------------------------------------------------------------------------
# Small helpers
# ---------------------------------------------------------------------------

def _round_up(x, m):
    return (x + m - 1) // m * m


def _sublane_granularity(dtype):
    """Minimum row-tile granularity for sublane packing of `dtype`."""
    bits = jnp.dtype(dtype).itemsize * 8
    if bits >= 32:
        return 8
    if bits == 16:
        return 16
    return 32


def _largest_divisor_tile(dim, candidates):
    for c in candidates:
        if dim % c == 0:
            return c
    return dim


# Per-TC VMEM capacity (v5e/v6e: 128 MiB, v7x: 64 MiB); conservative fallback.
try:
    _VMEM_CAP = int(pltpu.get_tpu_info().vmem_capacity_bytes)
except Exception:  # pragma: no cover
    _VMEM_CAP = 64 << 20
_VMEM_BUDGET = int(_VMEM_CAP * 0.70)     # target for tile selection


def _vmem_limit(need_bytes):
    """Scoped VMEM limit for CompilerParams, sized from actual tile usage."""
    return int(min(max(int(need_bytes * 1.25) + (2 << 20), 32 << 20),
                   int(_VMEM_CAP * 0.85)))


# ---------------------------------------------------------------------------
# Kernels
# ---------------------------------------------------------------------------

def _lora_mean_kernel(x_ref, v_ref, b_ref, o_ref, *, inv_f):
    """Mean-broadcast path: out = relu(mean(x, -1) * v + b).  Pure VPU."""
    # Reduce in the input dtype (no full-tile f32 upcast), cast the (tn, 1)
    # result, and multiply by 1/F.
    m = jnp.sum(x_ref[...], axis=-1, keepdims=True).astype(jnp.float32) * inv_f
    out = m * v_ref[...] + b_ref[...]                  # (tn,1)*(1,H) + (1,H)
    o_ref[...] = jnp.maximum(out, 0.0).astype(o_ref.dtype)


def _lora_dense_kernel(x_ref, w_ref, b_ref, o_ref, acc_ref):
    """>=3-D path: out = relu(x @ W_eff + b), W_eff = W^T + s*A@B (pre-folded).

    Grid = (row_blocks, n_blocks, k_blocks); K is the reduction axis with an
    f32 accumulator in VMEM scratch.
    """
    @pl.when(pl.program_id(2) == 0)
    def _():
        acc_ref[...] = jnp.zeros_like(acc_ref)

    x = x_ref[...]
    w = w_ref[...]
    if x.dtype != w.dtype:          # optional bf16 MXU feed (compute_dtype)
        x = x.astype(w.dtype)
    acc_ref[...] += jnp.dot(x, w, preferred_element_type=jnp.float32)

    @pl.when(pl.program_id(2) == pl.num_programs(2) - 1)
    def _():
        out = acc_ref[...] + b_ref[...]
        o_ref[...] = jnp.maximum(out, 0.0).astype(o_ref.dtype)


# ---------------------------------------------------------------------------
# One-time parameter preparation (hoisted out of the per-call path)
# ---------------------------------------------------------------------------

def prepare_lora_expert_params(params, *, rank=4, alpha=1.0, compute_dtype=None):
    """Fold the LoRA adapter into the dense weight once and cache it.

    Doing this per call costs ~3x H^2 HBM round-trips; callers should invoke
    this once and reuse the result across forward calls.

    compute_dtype: e.g. jnp.bfloat16 to feed the MXU at bf16 (f32 accumulation
    stays in-kernel).  Default None keeps f32 weights (matches the reference).
    """
    W = params["W"].astype(jnp.float32)       # nn.Linear weight, (out, in)
    b = params["b"].astype(jnp.float32)       # (out,)
    A = params["A"].astype(jnp.float32)       # (in, r)
    B = params["B"].astype(jnp.float32)       # (r, out)
    hidden = W.shape[0]
    scaling = alpha / rank

    w_eff = W.T + scaling * (A @ B)           # (in, out) == (H, H)
    if compute_dtype is not None:
        w_eff = w_eff.astype(compute_dtype)

    # Mean-broadcast fold: dense(x)+lora(x) for a constant row c is c*v + b.
    v = W.sum(axis=1) + scaling * (A.sum(axis=0) @ B)

    return {
        "hidden": hidden,
        "w_eff": w_eff,                        # (H, H)
        "bias": b.reshape(1, hidden),          # (1, H) f32
        "v": v.reshape(1, hidden),             # (1, H) f32
    }


# ---------------------------------------------------------------------------
# Forward wrapper
# ---------------------------------------------------------------------------

def lora_expert_forward(x, params, *, rank=4, alpha=1.0, row_tile=None):
    """Pallas forward reproducing LoRAExpert.forward (dropout p=0).

    `params` may be the raw {"W","b","A","B"} dict (prepared on the fly) or,
    preferably, the cached result of prepare_lora_expert_params().
    """
    prepared = (params if "w_eff" in params
                else prepare_lora_expert_params(params, rank=rank, alpha=alpha))
    hidden = prepared["hidden"]

    orig_shape = x.shape
    if x.ndim == 1:
        x2, apply_mean = x.reshape(1, -1), True
    elif x.ndim == 2:
        x2, apply_mean = x, True
    else:
        x2, apply_mean = x.reshape(-1, x.shape[-1]), False

    n = x2.shape[0]
    gran = _sublane_granularity(x2.dtype)
    xb = jnp.dtype(x2.dtype).itemsize
    ob = xb

    if apply_mean:
        # ------------------------------------------------------------------
        # Mean-broadcast path: HBM-bound, pure VPU.
        # ------------------------------------------------------------------
        f = x2.shape[1]
        rt = 1024 if row_tile is None else row_tile   # big tiles, writeback-bound
        tn = n if n <= rt else _round_up(rt, gran)

        def need_mean(tn_):
            return (2 * tn_ * f * xb            # x tiles (double-buffered)
                    + 2 * tn_ * hidden * ob     # out tiles
                    + 4 * hidden * 4)           # v + bias
        while tn > gran and need_mean(tn) > _VMEM_BUDGET:
            new_tn = max(gran, _round_up(tn // 2, gran))
            if new_tn >= tn:
                break
            tn = new_tn
        if tn > n:
            tn = n

        out = pl.pallas_call(
            functools.partial(_lora_mean_kernel, inv_f=float(1.0 / f)),
            out_shape=jax.ShapeDtypeStruct((n, hidden), x.dtype),
            grid=(pl.cdiv(n, tn),),
            in_specs=[
                pl.BlockSpec((tn, f), lambda i: (i, 0)),       # x row tile
                pl.BlockSpec((1, hidden), lambda i: (0, 0)),   # fused vector
                pl.BlockSpec((1, hidden), lambda i: (0, 0)),   # bias
            ],
            out_specs=pl.BlockSpec((tn, hidden), lambda i: (i, 0)),
            compiler_params=pltpu.CompilerParams(
                dimension_semantics=("parallel",),
                vmem_limit_bytes=_vmem_limit(need_mean(tn))),
        )(x2, prepared["v"], prepared["bias"])
    else:
        # ------------------------------------------------------------------
        # >=3-D path: (rows, N, K)-tiled matmul against the pre-folded weight.
        # ------------------------------------------------------------------
        if x2.shape[1] != hidden:
            raise ValueError(
                f"expected last dim {hidden}, got {x2.shape[1]}")
        w_eff = prepared["w_eff"]
        wb = jnp.dtype(w_eff.dtype).itemsize

        tiled = (hidden % 128 == 0)
        if tiled:
            # Prefer 256-multiples (v6e/v7x MXU is 256x256).  K stays at the
            # true hidden size so activations never need a per-call pad.
            n_tile = _largest_divisor_tile(hidden, (512, 256, 128))
            k_tile = _largest_divisor_tile(hidden, (1024, 512, 256, 128))
        else:
            # Small / odd hidden: single resident weight block (legal because
            # block dims equal the full array dims).
            # TODO(synk): for large hidden not divisible by 128, add a padded
            # K/N-tiled path (one-time padded weight + per-call masked K).
            n_tile = hidden
            k_tile = hidden

        rt = 512 if row_tile is None else row_tile
        tn = n if n <= rt else _round_up(rt, gran)

        def need_dense(tn_, kt, nt):
            return (2 * tn_ * kt * xb           # x tiles (double-buffered)
                    + 2 * kt * nt * wb          # weight tiles
                    + 2 * tn_ * nt * ob         # output tiles
                    + tn_ * nt * 4              # f32 accumulator scratch
                    + 4 * nt * 4)               # bias tiles

        # Shrink until the working set fits the per-TC VMEM budget
        # (important on v7x: 64 MiB).
        while need_dense(tn, k_tile, n_tile) > _VMEM_BUDGET:
            if tiled and k_tile > 128:
                k_tile //= 2
            elif tn > gran:
                new_tn = max(gran, _round_up(tn // 2, gran))
                if new_tn >= tn:
                    break
                tn = new_tn
            elif tiled and n_tile > 128:
                n_tile //= 2
            else:
                break
        if tn > n:
            tn = n

        grid = (pl.cdiv(n, tn), hidden // n_tile, hidden // k_tile)

        out = pl.pallas_call(
            _lora_dense_kernel,
            out_shape=jax.ShapeDtypeStruct((n, hidden), x.dtype),
            grid=grid,
            in_specs=[
                pl.BlockSpec((tn, k_tile), lambda i, j, k: (i, k)),     # x
                pl.BlockSpec((k_tile, n_tile), lambda i, j, k: (k, j)), # W_eff
                pl.BlockSpec((1, n_tile), lambda i, j, k: (0, j)),      # bias
            ],
            out_specs=pl.BlockSpec((tn, n_tile), lambda i, j, k: (i, j)),
            scratch_shapes=[pltpu.VMEM((tn, n_tile), jnp.float32)],
            compiler_params=pltpu.CompilerParams(
                dimension_semantics=("parallel", "parallel", "arbitrary"),
                vmem_limit_bytes=_vmem_limit(need_dense(tn, k_tile, n_tile))),
        )(x2, w_eff, prepared["bias"])

    if x.ndim <= 2:
        return out                  # torch returns (1, H) for 1-D input
    return out.reshape(*orig_shape[:-1], hidden)


# ---------------------------------------------------------------------------
# Pure-JAX reference mirroring the PyTorch forward exactly
# ---------------------------------------------------------------------------

def _reference(x, params, *, rank=4, alpha=1.0):
    W, b, A, B = params["W"], params["b"], params["A"], params["B"]
    H = W.shape[0]
    scaling = alpha / rank
    if x.ndim == 1:
        xp = jnp.broadcast_to(jnp.mean(x)[None, None], (1, H))
    elif x.ndim == 2:
        xp = jnp.broadcast_to(jnp.mean(x, axis=1, keepdims=True), (x.shape[0], H))
    else:
        xp = x
    dense = xp @ W.T + b
    lora = (xp @ A @ B) * scaling
    return jax.nn.relu(dense + lora)


if __name__ == "__main__":
    hidden_size = 32
    batch = 2
    seq = 8
    rank = 4
    alpha = 1.0

    key = jax.random.PRNGKey(0)
    k_x2, k_x3, k_w, k_b, k_a, k_lb = jax.random.split(key, 6)

    # Deterministic synthetic parameters (shapes per the module's __init__).
    bound_w = 1.0 / math.sqrt(hidden_size)
    W = jax.random.uniform(k_w, (hidden_size, hidden_size), jnp.float32,
                           -bound_w, bound_w)          # nn.Linear weight (out, in)
    b = jax.random.uniform(k_b, (hidden_size,), jnp.float32, -bound_w, bound_w)
    bound_a = 1.0 / math.sqrt(rank)
    A = jax.random.uniform(k_a, (hidden_size, rank), jnp.float32, -bound_a, bound_a)
    # NOTE: torch zero-inits lora_B (adapter starts as a no-op); use small
    # non-zero values so the LoRA path is actually exercised.
    B = 0.1 * jax.random.normal(k_lb, (rank, hidden_size), jnp.float32)

    params = {"W": W, "b": b, "A": A, "B": B}
    # One-time fold/cache (hoisted out of the per-call path).
    prepared = prepare_lora_expert_params(params, rank=rank, alpha=alpha)

    # 2-D input -> mean-broadcast (pure-VPU) path.
    x2 = jax.random.normal(k_x2, (batch, hidden_size), jnp.float32)
    out2 = jax.block_until_ready(lora_expert_forward(x2, prepared))
    ref2 = _reference(x2, params, rank=rank, alpha=alpha)
    assert out2.shape == (batch, hidden_size)
    assert jnp.allclose(out2, ref2, atol=1e-5, rtol=1e-5), "2-D path mismatch"

    # 1-D input -> (1, H), same mean-broadcast path.
    x1 = x2[0]
    out1 = jax.block_until_ready(lora_expert_forward(x1, prepared))
    ref1 = _reference(x1, params, rank=rank, alpha=alpha)
    assert out1.shape == (1, hidden_size)
    assert jnp.allclose(out1, ref1, atol=1e-5, rtol=1e-5), "1-D path mismatch"

    # 3-D input -> tiled-matmul path with folded weight.
    x3 = jax.random.normal(k_x3, (batch, seq, hidden_size), jnp.float32)
    out3 = jax.block_until_ready(lora_expert_forward(x3, prepared))
    ref3 = _reference(x3, params, rank=rank, alpha=alpha)
    assert out3.shape == (batch, seq, hidden_size)
    assert jnp.allclose(out3, ref3, atol=1e-5, rtol=1e-5), "3-D path mismatch"

    print("KERNEL_OK")
</pallas_src>

<mosaic_0001>
module attributes {stable_mosaic.version = 11 : i64} {
  func.func @_lora_mean_kernel(%arg0: i32, %arg1: memref<2x32xf32, #tpu.memory_space<vmem>>, %arg2: memref<1x32xf32, #tpu.memory_space<vmem>>, %arg3: memref<1x32xf32, #tpu.memory_space<vmem>>, %arg4: memref<2x32xf32, #tpu.memory_space<vmem>>) attributes {dimension_semantics = [#tpu.dimension_semantics<parallel>], iteration_bounds = array<i64: 1>, scalar_prefetch = 0 : i64, scratch_operands = 0 : i64, tpu.core_type = #tpu.core_type<tc>, window_params = [{transform_indices = @transform_0, window_bounds = array<i64: 2, 32>}, {pipeline_mode = #tpu.pipeline_mode<synchronous>, transform_indices = @transform_1, window_bounds = array<i64: 1, 32>}, {pipeline_mode = #tpu.pipeline_mode<synchronous>, transform_indices = @transform_2, window_bounds = array<i64: 1, 32>}, {transform_indices = @transform_3, window_bounds = array<i64: 2, 32>}]} {
    %c0 = arith.constant 0 : index
    %c0_0 = arith.constant 0 : index
    %0 = vector.load %arg1[%c0, %c0_0] : memref<2x32xf32, #tpu.memory_space<vmem>>, vector<2x32xf32>
    %cst = arith.constant dense<0.000000e+00> : vector<2xf32>
    %1 = vector.multi_reduction <add>, %0, %cst [1] : vector<2x32xf32> to vector<2xf32>
    %2 = vector.shape_cast %1 : vector<2xf32> to vector<2x1xf32>
    %cst_1 = arith.constant 3.125000e-02 : f32
    %3 = vector.broadcast %cst_1 : f32 to vector<2x1xf32>
    %4 = arith.mulf %2, %3 : vector<2x1xf32>
    %c0_2 = arith.constant 0 : index
    %c0_3 = arith.constant 0 : index
    %5 = vector.load %arg2[%c0_2, %c0_3] : memref<1x32xf32, #tpu.memory_space<vmem>>, vector<1x32xf32>
    %6 = vector.broadcast %4 : vector<2x1xf32> to vector<2x32xf32>
    %7 = vector.broadcast %5 : vector<1x32xf32> to vector<2x32xf32>
    %8 = arith.mulf %6, %7 : vector<2x32xf32>
    %c0_4 = arith.constant 0 : index
    %c0_5 = arith.constant 0 : index
    %9 = vector.load %arg3[%c0_4, %c0_5] : memref<1x32xf32, #tpu.memory_space<vmem>>, vector<1x32xf32>
    %10 = vector.broadcast %9 : vector<1x32xf32> to vector<2x32xf32>
    %11 = arith.addf %8, %10 : vector<2x32xf32>
    %cst_6 = arith.constant 0.000000e+00 : f32
    %12 = vector.broadcast %cst_6 : f32 to vector<2x32xf32>
    %13 = arith.maximumf %11, %12 : vector<2x32xf32>
    %c0_7 = arith.constant 0 : index
    %c0_8 = arith.constant 0 : index
    %14 = vector.load %arg4[%c0_7, %c0_8] : memref<2x32xf32, #tpu.memory_space<vmem>>, vector<2x32xf32>
    tpu.vector_store %arg4[%c0_7, %c0_8], %13 {strides = array<i32>} : memref<2x32xf32, #tpu.memory_space<vmem>>, vector<2x32xf32>,
    return
  }
  func.func @transform_0(%arg0: i32) -> (i32, i32) {
    %c0_i32 = arith.constant 0 : i32
    %c0_i32_0 = arith.constant 0 : i32
    return %arg0, %c0_i32 : i32, i32
  }
  func.func @transform_1(%arg0: i32) -> (i32, i32) {
    %c0_i32 = arith.constant 0 : i32
    %c0_i32_0 = arith.constant 0 : i32
    %c0_i32_1 = arith.constant 0 : i32
    return %c0_i32, %c0_i32_0 : i32, i32
  }
  func.func @transform_2(%arg0: i32) -> (i32, i32) {
    %c0_i32 = arith.constant 0 : i32
    %c0_i32_0 = arith.constant 0 : i32
    %c0_i32_1 = arith.constant 0 : i32
    return %c0_i32, %c0_i32_0 : i32, i32
  }
  func.func @transform_3(%arg0: i32) -> (i32, i32) {
    %c0_i32 = arith.constant 0 : i32
    %c0_i32_0 = arith.constant 0 : i32
    return %arg0, %c0_i32 : i32, i32
  }
}

</mosaic_0001>

<bundles_post_ra>
// kernel: tpu_custom_call.1
= control target key start
LH: loop header
LB: loop body
LE: loop exit
PB: predicated region body
PF: predicated region fallthrough
CT: control target
= control target key end

     0   :  { %8 = vsyncpa [#allocation3], 0  ;;  %s170_s0 = inlined_call_operand.hbm [shape: f32[2,32], index: 0, kind: input, shape index: {}]   ;;  %s171_s1 = inlined_call_operand.vmem [shape: f32[1,32], index: 1, kind: input, shape index: {}]   ;;  %s172_s2 = inlined_call_operand.vmem [shape: f32[1,32], index: 2, kind: input, shape index: {}]   ;;  %s173_s3 = inlined_call_operand.hbm [shape: f32[2,32], index: 3, kind: output, shape index: {}]  }
   0x1   :  { %9 = vsyncpa [#allocation4], 0  ;;  %s118_s12 = smov [#allocation2]   ;;  %s70_s16 = scalar_lea.hbm %s170_s0, 32 }
   0x2   :  { %s16_s13 = sshll.u32 %s118_s12, 4  ;;  %p71_p0 = scmp.ne.s32.totalorder %s170_s0, %s70_s16  ;;  %s17_s13 = int_to_ptr.vmem [resolvable:$true] %s16_s13 }
   0x3   :  { %p74_p1 = scmp.lt.u32.totalorder %s70_s16, %s170_s0 }
   0x5   :  { %p76_p2 = pnand %p74_p1, %p71_p0 }
   0x7   :  { %79 = shalt.err (!%p76_p2)
}
   0x8   :  { %s80_s21 = scalar_lea.vmem %s17_s13, 32  ;;  %p85_p4 = scmp.lt.s32.totalorder %s17_s13, %s17_s13 }
   0x9   :  { %p81_p3 = scmp.ne.s32.totalorder %s17_s13, %s80_s21  ;;  %p86_p5 = scmp.lt.s32.totalorder %s80_s21, %s80_s21 }
   0xb   :  { %p87_p6 = por %p86_p5, %p85_p4 }
   0xd   :  { %p88_p7 = pnand %p87_p6, %p81_p3 }
   0xf   :  { %91 = shalt.err (!%p88_p7)
}
  0x10   :  { %19 = dma.hbm_to_vmem [thread:$0]  %s170_s0, 32, %s17_s13, [#allocation3]  }
  0x11   :  { %114 = dma.done.wait [#allocation3], 32  }
  0x12   :  { %115 = vsyncadd [#allocation3], 4294967264  ;;  %vm28_vm0 = vcmask 254976   ;;  %v27_v0 = vld [vmem:[#allocation2] sm:$0x3]  ;;  %s119_s28 = smov [#allocation5]  }
  0x13   :  { %v29_v1 = vsel %vm28_vm0, %v27_v0, 0.0  ;;  %v66_v3 = vld [vmem:[%s171_s1] ss:$0 sm:$0xff]  ;;  %s57_s29 = sshll.u32 %s119_s28, 4  ;;  %s58_s29 = int_to_ptr.vmem [resolvable:$true] %s57_s29 }
  0x14   :  { %30 = vadd.xlane.f32.xlu0 %v29_v1  ;;  %v67_v5 = vld [vmem:[%s172_s2] ss:$0 sm:$0xff]  ;;  %s92_s0 = scalar_lea.vmem %s58_s29, 32  ;;  %p97_p9 = scmp.lt.s32.totalorder %s58_s29, %s58_s29 }
  0x15   :  { %p93_p8 = scmp.ne.s32.totalorder %s58_s29, %s92_s0  ;;  %p98_p10 = scmp.lt.s32.totalorder %s92_s0, %s92_s0 }
  0x17   :  { %p99_p11 = por %p98_p10, %p97_p9 }
  0x19   :  { %p100_p12 = pnand %p99_p11, %p93_p8 }
  0xa1   :  { %v31_v2 = vpop.xlane.xlu0 %30 }
  0xa2   :  { %v32_v4 = vmul.f32 0.03125, %v31_v2 }
  0xa4   :  { %v40_v6 = vmul.f32 %v66_v3, %v32_v4 }
  0xa6   :  { %v48_v7 = vadd.f32 %v67_v5, %v40_v6 }
  0xa8   :  { %v49_v8 = vmax.f32 %v48_v7, 0.0 }
  0xaa   :  { %50 = vst.msk [vmem:[#allocation5] sm:$0x3] %vm28_vm0, %v49_v8 }
  0xab   :  { %103 = shalt.err (!%p100_p12)
}
  0xac   :  { %s104_s4 = scalar_lea.hbm %s173_s3, 32 }
  0xad   :  { %p105_p13 = scmp.ne.s32.totalorder %s173_s3, %s104_s4  ;;  %p108_p0 = scmp.lt.u32.totalorder %s104_s4, %s173_s3 }
  0xaf   :  { %p110_p1 = pnand %p108_p0, %p105_p13 }
  0xb1   :  { %113 = shalt.err (!%p110_p1)
}
  0xb2   :  { %60 = dma.vmem_to_hbm [thread:$0]  %s58_s29, 32, %s173_s3, [#allocation4]  }
  0xb3   :  { %116 = dma.done.wait [#allocation4], 32  }
  0xb4   :  { %117 = vsyncadd [#allocation4], 4294967264 }
  0xb5   :  { %64 = vsyncpa [#allocation3], 1 }
  0xb6   :  { %65 = vsyncpa [#allocation4], 1 }

</bundles_post_ra>
